<compile_context>
chip_gen: v7x
topology: tpu7x:2x2x1
jax: 0.10.0
libtpu: 0.0.40
codegen_flags: <defaults>
</compile_context>

<pallas_src>
import jax
import jax.numpy as jnp
from jax.experimental import pallas as pl
from jax.experimental.pallas import tpu as pltpu


# ---------------------------------------------------------------------------
# Primary path: zero-copy via input/output aliasing (no DMA, no compute).
# ---------------------------------------------------------------------------
def _alias_touch_kernel(x_ref, o_ref):
    # x_ref and o_ref are raw HBM refs aliasing the SAME buffer
    # (input_output_aliases={0: 0}); nothing needs to move.  touch()
    # materializes the aliased output without issuing any DMA.
    del x_ref
    pltpu.touch(o_ref)


def _unflatten_zero_copy(x):
    N, F = x.shape
    return pl.pallas_call(
        _alias_touch_kernel,
        out_shape=jax.ShapeDtypeStruct((N, F), x.dtype),
        in_specs=[pl.BlockSpec(memory_space=pl.ANY)],   # raw HBM ref, no auto-DMA
        out_specs=pl.BlockSpec(memory_space=pl.ANY),
        input_output_aliases={0: 0},                    # output == input buffer
    )(x)


# ---------------------------------------------------------------------------
# Fallback path: tuned, tiled identity copy.
# ---------------------------------------------------------------------------
def _copy_kernel(x_ref, o_ref):
    o_ref[...] = x_ref[...]


def _sublane_quantum(dtype):
    # Native sublane multiple: 8 for 32-bit, 16 for bf16, 32 for int8/fp8.
    return max(8, 32 // jnp.dtype(dtype).itemsize)


def _slab_view(N, F, dtype):
    """Pick a lane/sublane-dense 2-D view (R, L) of the flat N*F elements.

    A pure byte copy is layout-agnostic, so any 2-D factorization is legal.
    Prefer cols that are a multiple of 128 (unmasked vst, contiguous DMA) and
    rows that are a multiple of the dtype's sublane quantum."""
    total = N * F
    q = _sublane_quantum(dtype)
    for lanes in (2048, 1024, 512, 256, 128):
        if total % lanes == 0 and (total // lanes) % q == 0:
            return total // lanes, lanes
    for lanes in (2048, 1024, 512, 256, 128):
        if total % lanes == 0:
            return total // lanes, lanes
    # Awkward/small totals: keep the original (N, F) view; a full-array block
    # is always a legal block shape.
    return N, F


def _choose_tiles(R, L, dtype, target_bytes):
    """~target_bytes per tile, (8,128)-rule compliant, lane-dense, and
    preferring exact divisors (no masked edge tiles)."""
    itemsize = jnp.dtype(dtype).itemsize
    q = _sublane_quantum(dtype)
    row_bytes = L * itemsize

    if R * row_bytes <= target_bytes:
        return R, L                                     # single full block

    if row_bytes > target_bytes:
        # A single row is already huge: tile along lanes in 128-multiples.
        tile_r = min(R, q)
        tile_l = max(128, (target_bytes // (tile_r * itemsize * 128)) * 128)
        return tile_r, min(tile_l, L)

    # Whole rows fit: keep the last dim full (lane-dense), tile along rows.
    max_rows = max(q, (target_bytes // row_bytes // q) * q)
    rows = max_rows
    while rows >= q:                                    # prefer exact divisors
        if R % rows == 0:
            return rows, L
        rows -= q
    return min(R, max_rows), L                          # remainder tile (masked edge)


def _unflatten_copy(x, target_bytes=2 << 20):
    N, F = x.shape
    R, L = _slab_view(N, F, x.dtype)
    slab = x.reshape(R, L)                              # metadata-only view
    tile_r, tile_l = _choose_tiles(R, L, x.dtype, target_bytes)
    grid = (pl.cdiv(R, tile_r), pl.cdiv(L, tile_l))

    itemsize = jnp.dtype(x.dtype).itemsize
    tile_bytes = tile_r * tile_l * itemsize
    # Pipeline footprint = 2 buffers x (in + out) x tile, plus headroom.
    vmem_limit = min(32 << 20, max(16 << 20, 4 * tile_bytes + (2 << 20)))

    out = pl.pallas_call(
        _copy_kernel,
        out_shape=jax.ShapeDtypeStruct((R, L), x.dtype),
        grid=grid,
        in_specs=[pl.BlockSpec((tile_r, tile_l), lambda i, j: (i, j))],
        out_specs=pl.BlockSpec((tile_r, tile_l), lambda i, j: (i, j)),
        compiler_params=pltpu.CompilerParams(
            dimension_semantics=("parallel", "parallel"),
            vmem_limit_bytes=vmem_limit,
        ),
        cost_estimate=pl.CostEstimate(
            flops=0, transcendentals=0, bytes_accessed=2 * R * L * itemsize),
    )(slab)
    return out.reshape(N, F)


# ---------------------------------------------------------------------------
# Public wrapper (matches Unflatten.forward).
# ---------------------------------------------------------------------------
def unflatten(x, C=128, H=7, W=7):
    """Pallas equivalent of Unflatten.forward: (N, C*H*W) -> (N, C, H, W)."""
    N, F = x.shape
    assert F == C * H * W, f"expected last dim {C * H * W}, got {F}"
    try:
        flat = _unflatten_zero_copy(x)
        flat = jax.block_until_ready(flat)   # surface any lowering issue here
    except Exception:
        # Belt-and-braces: if the alias/touch path cannot lower on this
        # backend, fall back to the tuned tiled copy (still correct).
        flat = _unflatten_copy(x)
    # Pure metadata reshape (glue), identical to torch .view(N, C, H, W).
    return flat.reshape(N, C, H, W)


if __name__ == "__main__":
    # Small shapes consistent with the module: N=2, C=4, H=7, W=7.
    N, C, H, W = 2, 4, 7, 7
    key = jax.random.PRNGKey(0)
    x = jax.random.normal(key, (N, C * H * W), dtype=jnp.float32)

    ref = x.reshape(N, C, H, W)           # row-major reshape == torch .view

    out = unflatten(x, C, H, W)
    out = jax.block_until_ready(out)

    assert out.shape == (N, C, H, W), out.shape
    assert out.dtype == x.dtype
    assert bool(jnp.array_equal(out, ref))

    # Also exercise the tuned tiled-copy path so both code paths stay verified.
    out_copy = jax.block_until_ready(_unflatten_copy(x)).reshape(N, C, H, W)
    assert bool(jnp.array_equal(out_copy, ref))

    print("KERNEL_OK")
</pallas_src>

<mosaic_0001>
module attributes {stable_mosaic.version = 11 : i64} {
  func.func @_alias_touch_kernel(%arg0: memref<2x196xf32, #tpu.memory_space<any>>, %arg1: memref<2x196xf32, #tpu.memory_space<any>>) attributes {dimension_semantics = [], scalar_prefetch = 0 : i64, scratch_operands = 0 : i64, tpu.core_type = #tpu.core_type<tc>} {
    return
  }
}

module attributes {stable_mosaic.version = 11 : i64} {
  func.func @_copy_kernel(%arg0: i32, %arg1: i32, %arg2: memref<2x196xf32, #tpu.memory_space<vmem>>, %arg3: memref<2x196xf32, #tpu.memory_space<vmem>>) attributes {dimension_semantics = [#tpu.dimension_semantics<parallel>, #tpu.dimension_semantics<parallel>], iteration_bounds = array<i64: 1, 1>, scalar_prefetch = 0 : i64, scratch_operands = 0 : i64, tpu.core_type = #tpu.core_type<tc>, window_params = [{transform_indices = @transform_0, window_bounds = array<i64: 2, 196>}, {transform_indices = @transform_1, window_bounds = array<i64: 2, 196>}]} {
    %c0 = arith.constant 0 : index
    %c0_0 = arith.constant 0 : index
    %0 = vector.load %arg2[%c0, %c0_0] : memref<2x196xf32, #tpu.memory_space<vmem>>, vector<2x196xf32>
    %c0_1 = arith.constant 0 : index
    %c0_2 = arith.constant 0 : index
    %1 = vector.load %arg3[%c0_1, %c0_2] : memref<2x196xf32, #tpu.memory_space<vmem>>, vector<2x196xf32>
    tpu.vector_store %arg3[%c0_1, %c0_2], %0 {strides = array<i32>} : memref<2x196xf32, #tpu.memory_space<vmem>>, vector<2x196xf32>,
    return
  }
  func.func @transform_0(%arg0: i32, %arg1: i32) -> (i32, i32) {
    %c0_i32 = arith.constant 0 : i32
    return %arg0, %arg1 : i32, i32
  }
  func.func @transform_1(%arg0: i32, %arg1: i32) -> (i32, i32) {
    %c0_i32 = arith.constant 0 : i32
    return %arg0, %arg1 : i32, i32
  }
}

</mosaic_0001>

<bundles_post_ra>
// kernel: tpu_custom_call.1
= control target key start
LH: loop header
LB: loop body
LE: loop exit
PB: predicated region body
PF: predicated region fallthrough
CT: control target
= control target key end

     0   :  { %s16_s0 = inlined_call_operand.hbm [shape: f32[2,196], index: 0, kind: input, shape index: {}, may-alias: {0,1}]   ;;  %s17_s1 = inlined_call_operand.hbm [shape: f32[2,196], index: 1, kind: output, shape index: {}, may-alias: {0,1}]  }

// kernel: tpu_custom_call.1
= control target key start
LH: loop header
LB: loop body
LE: loop exit
PB: predicated region body
PF: predicated region fallthrough
CT: control target
= control target key end

     0   :  { %6 = vsyncpa [#allocation3], 0  ;;  %s127_s0 = inlined_call_operand.hbm [shape: f32[2,196], index: 0, kind: input, shape index: {}]   ;;  %s128_s1 = inlined_call_operand.hbm [shape: f32[2,196], index: 1, kind: output, shape index: {}]  }
   0x1   :  { %7 = vsyncpa [#allocation4], 0  ;;  %s91_s6 = smov [#allocation2]   ;;  %s43_s10 = scalar_lea.hbm %s127_s0, 64 }
   0x2   :  { %s14_s7 = sshll.u32 %s91_s6, 4  ;;  %p44_p0 = scmp.ne.s32.totalorder %s127_s0, %s43_s10  ;;  %s15_s7 = int_to_ptr.vmem [resolvable:$true] %s14_s7 }
   0x3   :  { %p47_p1 = scmp.lt.u32.totalorder %s43_s10, %s127_s0 }
   0x5   :  { %p49_p2 = pnand %p47_p1, %p44_p0 }
   0x7   :  { %52 = shalt.err (!%p49_p2)
}
   0x8   :  { %s53_s15 = scalar_lea.vmem %s15_s7, 64  ;;  %p58_p4 = scmp.lt.s32.totalorder %s15_s7, %s15_s7 }
   0x9   :  { %p54_p3 = scmp.ne.s32.totalorder %s15_s7, %s53_s15  ;;  %p59_p5 = scmp.lt.s32.totalorder %s53_s15, %s53_s15 }
   0xb   :  { %p60_p6 = por %p59_p5, %p58_p4 }
   0xd   :  { %p61_p7 = pnand %p60_p6, %p54_p3 }
   0xf   :  { %64 = shalt.err (!%p61_p7)
}
  0x10   :  { %17 = dma.hbm_to_vmem [thread:$0]  %s127_s0, 64, %s15_s7, [#allocation3]  }
  0x11   :  { %87 = dma.done.wait [#allocation3], 64  }
  0x12   :  { %88 = vsyncadd [#allocation3], 4294967232  ;;  %vm22_vm0 = vcmask 1041408   ;;  %vm23_vm1 = vcmask 551938   ;;  %s92_s18 = smov [#allocation5]  }
  0x13   :  { %s32_s19 = sshll.u32 %s92_s18, 4  ;;  %vm24_vm2 = vmor %vm23_vm1, %vm22_vm0  ;;  %v21_v0 = vld [vmem:[#allocation2] sm:$0xf]  ;;  %s33_s19 = int_to_ptr.vmem [resolvable:$true] %s32_s19 }
  0x14   :  { %25 = vst.msk [vmem:[#allocation5] sm:$0xf] %vm24_vm2, %v21_v0  ;;  %s65_s20 = scalar_lea.vmem %s33_s19, 64  ;;  %p70_p9 = scmp.lt.s32.totalorder %s33_s19, %s33_s19 }
  0x15   :  { %p66_p8 = scmp.ne.s32.totalorder %s33_s19, %s65_s20  ;;  %p71_p10 = scmp.lt.s32.totalorder %s65_s20, %s65_s20 }
  0x17   :  { %p72_p11 = por %p71_p10, %p70_p9 }
  0x19   :  { %p73_p12 = pnand %p72_p11, %p66_p8 }
  0x1b   :  { %76 = shalt.err (!%p73_p12)
}
  0x1c   :  { %s77_s0 = scalar_lea.hbm %s128_s1, 64 }
  0x1d   :  { %p78_p13 = scmp.ne.s32.totalorder %s128_s1, %s77_s0  ;;  %p81_p0 = scmp.lt.u32.totalorder %s77_s0, %s128_s1 }
  0x1f   :  { %p83_p1 = pnand %p81_p0, %p78_p13 }
  0x21   :  { %86 = shalt.err (!%p83_p1)
}
  0x22   :  { %35 = dma.vmem_to_hbm [thread:$0]  %s33_s19, 64, %s128_s1, [#allocation4]  }
  0x23   :  { %89 = dma.done.wait [#allocation4], 64  }
  0x24   :  { %90 = vsyncadd [#allocation4], 4294967232 }
  0x25   :  { %39 = vsyncpa [#allocation3], 1 }
  0x26   :  { %40 = vsyncpa [#allocation4], 1 }

</bundles_post_ra>
